<compile_context>
chip_gen: v7x
topology: tpu7x:2x2x1
jax: 0.10.0
libtpu: 0.0.40
codegen_flags: <defaults>
</compile_context>

<pallas_src>
import functools

import jax
import jax.numpy as jnp
from jax.experimental import pallas as pl
from jax.experimental.pallas import tpu as pltpu


def _pair(v):
    return (v, v) if isinstance(v, int) else tuple(v)


def _round_up(n, m):
    return ((n + m - 1) // m) * m


# -----------------------------------------------------------------------------
# Kernel body: one grid step == one batch element.  Taps and input channels are
# statically unrolled; weights are a resident flat 2-D VMEM slab.
# -----------------------------------------------------------------------------
def _local_fc_kernel(x_ref, w_ref, *rest, tap_shifts, cin, cout, use_bias):
    if use_bias:
        bias_ref, o_ref = rest
    else:
        (o_ref,) = rest

    # Hoist this batch element's per-channel rows (reused by every tap).
    x_rows = [x_ref[pl.ds(l, 1), :].astype(jnp.float32) for l in range(cin)]

    acc = None
    for tap, shift in enumerate(tap_shifts):
        base = tap * cin * cout
        # prod[m, p] = sum_l x[l, p] * w[tap, l, m, p]  (unrolled FMA loop;
        # live set stays at one (Cout, P_pad) tile — no (Cin,Cout,P) temp).
        prod = None
        for l in range(cin):
            w_rows = w_ref[pl.ds(base + l * cout, cout), :].astype(jnp.float32)
            term = x_rows[l] * w_rows                       # (Cout, P_pad)
            prod = term if prod is None else prod + term
        # Static lane rotation of the fresh product (XLU slot; overlaps the
        # next tap's VPU FMAs).  shift = i*GW + j maps position p -> p+shift.
        if shift:
            prod = pltpu.roll(prod, shift=shift, axis=1)
        acc = prod if acc is None else acc + prod

    if use_bias:
        acc = acc + bias_ref[...].astype(jnp.float32)

    o_ref[...] = acc.astype(o_ref.dtype)                    # single writeback


# -----------------------------------------------------------------------------
# Parameter relayout (hoistable: call once per model for repeated forwards).
# -----------------------------------------------------------------------------
def pack_local_fc_params(weights, bias, *, kernel_size, stride=(1, 1),
                         boundary='extend', compute_dtype=jnp.float32):
    kh, kw = _pair(kernel_size)
    sh, sw = _pair(stride)
    Cin, Cout, H, W = weights.shape[:4]
    assert weights.shape == (Cin, Cout, H, W, kh, kw), weights.shape

    if boundary == 'extend':
        if (sh, sw) != (1, 1):
            # TODO(synk): stride>1 'extend' needs a dilated scatter of the
            # per-tap maps, which the static roll-accumulate scheme cannot express.
            raise NotImplementedError("extend boundary: only stride=(1,1) supported")
        OH, OW = (H - 1) * sh + kh, (W - 1) * sw + kw
        GH, GW = OH, OW                 # accumulation grid = output coordinates
        crop_r, crop_c = 0, 0
    elif boundary == 'shrink':
        if (sh, sw) != (1, 1):
            raise ValueError("shrink boundary requires stride=(1,1)")
        OH, OW = H + 1 - kh, W + 1 - kw
        GH, GW = H, W                   # accumulation grid = input coordinates
        crop_r, crop_c = kh - 1, kw - 1
    else:
        raise ValueError(f"bad boundary {boundary!r}")

    P = GH * GW
    P_pad = max(_round_up(P, 128), 128)     # lane-dense, unmasked vld/vst

    # --- static wrap-around safety check (pltpu.roll is circular) ------------
    # Nonzero inputs live at flattened positions <= max_src; a tap shifts by at
    # most max_shift.  Contributions that roll past P_pad wrap to the front and
    # must land strictly before the first kept output position.  (Column bleed
    # c+j >= GW lands at column <= kw-2 < crop_c for 'shrink' and cannot occur
    # for 'extend'; row bleed lands at >= P and is dropped by the :P slice.)
    max_src = (H - 1) * GW + (W - 1)
    max_shift = (kh - 1) * GW + (kw - 1)
    if max_src + max_shift >= P_pad:
        first_kept = crop_r * GW + crop_c
        assert max_src + max_shift - P_pad < first_kept, (
            "circular roll wrap-around would corrupt the kept output window")

    # weights: (Cin,Cout,H,W,kh,kw) -> (kh,kw,Cin,Cout,GH,GW) -> flat 2-D
    # (kh*kw*Cin*Cout, P_pad); row index = ((i*kw+j)*Cin + l)*Cout + m.
    w_t = jnp.transpose(weights, (4, 5, 0, 1, 2, 3)).astype(compute_dtype)
    w_g = jnp.pad(w_t, ((0, 0),) * 4 + ((0, GH - H), (0, GW - W)))
    w_f = jnp.pad(w_g.reshape(kh * kw * Cin * Cout, P), ((0, 0), (0, P_pad - P)))

    # bias: embed (Cout,OH,OW) at the crop offset of the accumulation grid.
    if bias is not None:
        b_g = jnp.zeros((Cout, GH, GW), jnp.float32)
        b_g = b_g.at[:, crop_r:crop_r + OH, crop_c:crop_c + OW].set(
            bias.astype(jnp.float32))
        b_f = jnp.pad(b_g.reshape(Cout, P), ((0, 0), (0, P_pad - P)))
    else:
        b_f = None

    geom = dict(kh=kh, kw=kw, Cin=Cin, Cout=Cout, H=H, W=W, OH=OH, OW=OW,
                GH=GH, GW=GW, P=P, P_pad=P_pad, crop_r=crop_r, crop_c=crop_c,
                compute_dtype=compute_dtype)
    return w_f, b_f, geom


# -----------------------------------------------------------------------------
# Forward with pre-packed parameters.
# -----------------------------------------------------------------------------
def local_fc_apply(x, w_f, b_f, geom):
    kh, kw = geom['kh'], geom['kw']
    Cin, Cout = geom['Cin'], geom['Cout']
    H, W, OH, OW = geom['H'], geom['W'], geom['OH'], geom['OW']
    GH, GW, P, P_pad = geom['GH'], geom['GW'], geom['P'], geom['P_pad']
    crop_r, crop_c = geom['crop_r'], geom['crop_c']
    compute_dtype = geom['compute_dtype']
    use_bias = b_f is not None

    B = x.shape[0]
    assert x.shape == (B, Cin, H, W), x.shape

    # x: (B,Cin,H,W) -> zero-pad onto the accumulation grid -> lane-dense flat.
    x_g = jnp.pad(x.astype(compute_dtype),
                  ((0, 0), (0, 0), (0, GH - H), (0, GW - W)))
    x_f = jnp.pad(x_g.reshape(B, Cin, P), ((0, 0), (0, 0), (0, P_pad - P)))

    # VMEM budget: resident packed weights + double-buffered x/out (+ bias).
    itemsize = jnp.dtype(compute_dtype).itemsize
    w_bytes = kh * kw * Cin * Cout * P_pad * itemsize
    x_blk = Cin * P_pad * itemsize
    o_blk = Cout * P_pad * 4
    b_blk = Cout * P_pad * 4 if use_bias else 0
    vmem_need = w_bytes + 2 * (x_blk + o_blk) + b_blk
    budget = 44 * 1024 * 1024           # conservative: v7x has 64 MiB VMEM / TC
    if vmem_need > budget:
        # TODO(synk): for weight tensors too large to stay resident, stream
        # per-tap (Cin*Cout, P_pad) slabs with pltpu.emit_pipeline (and/or add
        # a Cout grid axis) instead of the resident-weights scheme below.
        raise NotImplementedError(
            f"packed weights ({vmem_need / 2**20:.1f} MiB) exceed the resident "
            f"VMEM budget ({budget / 2**20:.0f} MiB)")
    vmem_limit = int(min(max(vmem_need + (4 << 20), 16 << 20), 48 << 20))

    tap_shifts = tuple(i * GW + j for i in range(kh) for j in range(kw))
    kernel = functools.partial(_local_fc_kernel, tap_shifts=tap_shifts,
                               cin=Cin, cout=Cout, use_bias=use_bias)

    in_specs = [
        # x: one batch element per grid step (batch axis squeezed).
        pl.BlockSpec((None, Cin, P_pad), lambda b: (b, 0, 0)),
        # packed weights: constant block index -> DMA'd once, resident in VMEM.
        pl.BlockSpec((kh * kw * Cin * Cout, P_pad), lambda b: (0, 0)),
    ]
    operands = [x_f, w_f]
    if use_bias:
        in_specs.append(pl.BlockSpec((Cout, P_pad), lambda b: (0, 0)))
        operands.append(b_f)

    acc = pl.pallas_call(
        kernel,
        grid=(B,),
        in_specs=in_specs,
        out_specs=pl.BlockSpec((None, Cout, P_pad), lambda b: (b, 0, 0)),
        out_shape=jax.ShapeDtypeStruct((B, Cout, P_pad), jnp.float32),
        compiler_params=pltpu.CompilerParams(
            dimension_semantics=("parallel",),
            vmem_limit_bytes=vmem_limit),
    )(*operands)

    # Un-flatten the lane-dense accumulator and crop to the module's output.
    out = acc[:, :, :P].reshape(B, Cout, GH, GW)
    return out[:, :, crop_r:crop_r + OH, crop_c:crop_c + OW]


def local_fc_layer_2d(x, weights, bias=None, *, kernel_size, stride=(1, 1),
                      boundary='extend', compute_dtype=jnp.float32):
    """One-shot forward of LocalFCLayer2D.  For repeated calls, hoist
    pack_local_fc_params(...) once and call local_fc_apply(...) directly."""
    w_f, b_f, geom = pack_local_fc_params(
        weights, bias, kernel_size=kernel_size, stride=stride,
        boundary=boundary, compute_dtype=compute_dtype)
    return local_fc_apply(x, w_f, b_f, geom)


# -----------------------------------------------------------------------------
# Pure-JAX transcription of the PyTorch forward (verification only).
# -----------------------------------------------------------------------------
def _reference(x, weights, bias, kernel_size, stride, boundary):
    kh, kw = kernel_size
    sh, sw = stride
    B, Cin, H, W = x.shape
    Cout = weights.shape[1]
    y = jnp.einsum('blij,lmijrs->bmrsij', x, weights)
    if boundary == 'extend':
        OH, OW = (H - 1) * sh + kh, (W - 1) * sw + kw
        out = jnp.zeros((B, Cout, OH, OW), jnp.float32)
        for i in range(kh):
            for j in range(kw):
                out = out.at[:, :, i:OH - kh + i + 1:sh,
                             j:OW - kw + j + 1:sw].add(y[:, :, i, j])
    else:
        OH, OW = H + 1 - kh, W + 1 - kw
        out = jnp.zeros((B, Cout, OH, OW), jnp.float32)
        for i in range(kh):
            for j in range(kw):
                out = out + y[:, :, i, j, kh - 1 - i:H - i, kw - 1 - j:W - j]
    return out + bias if bias is not None else out


if __name__ == "__main__":
    def run_case(B, Cin, Cout, H, W, kh, kw, boundary, use_bias, key,
                 compute_dtype=jnp.float32, atol=1e-4, rtol=1e-4):
        kx, kwt, kb = jax.random.split(key, 3)
        if boundary == 'extend':
            OH, OW = H + kh - 1, W + kw - 1
        else:
            OH, OW = H - kh + 1, W - kw + 1
        x = jax.random.normal(kx, (B, Cin, H, W), jnp.float32)
        # Parameter shapes match LocalFCLayer2D.__init__ (random values instead
        # of the constant ones/(kh*kw) init for a stronger numerical check).
        weights = jax.random.normal(
            kwt, (Cin, Cout, H, W, kh, kw), jnp.float32) / (kh * kw)
        bias = (jax.random.normal(kb, (Cout, OH, OW), jnp.float32)
                if use_bias else None)

        out = local_fc_layer_2d(x, weights, bias, kernel_size=(kh, kw),
                                stride=(1, 1), boundary=boundary,
                                compute_dtype=compute_dtype)
        out = jax.block_until_ready(out)

        ref = _reference(x, weights, bias, (kh, kw), (1, 1), boundary)
        assert out.shape == (B, Cout, OH, OW), (out.shape, (B, Cout, OH, OW))
        err = float(jnp.max(jnp.abs(out - ref)))
        assert jnp.allclose(out, ref, atol=atol, rtol=rtol), (
            boundary, str(compute_dtype), err)

    key = jax.random.PRNGKey(0)
    k1, k2, k3, k4, k5 = jax.random.split(key, 5)
    # Primary: module-default-style shapes, 'extend' boundary.
    run_case(2, 4, 4, 16, 16, 3, 3, 'extend', True, k1)
    # Asymmetric shapes / taps, 'shrink' boundary with P_pad > P.
    run_case(2, 4, 6, 16, 12, 3, 2, 'shrink', True, k2)
    # 'shrink' boundary with P_pad == P: exercises the circular roll wrap.
    run_case(2, 4, 4, 16, 16, 3, 3, 'shrink', True, k3)
    # No-bias path (bias operand dropped entirely).
    run_case(2, 4, 4, 16, 16, 3, 3, 'extend', False, k4)
    # bf16 compute path (v6e/v7x weight-traffic option), looser tolerance.
    run_case(2, 4, 4, 16, 16, 3, 3, 'extend', True, k5,
             compute_dtype=jnp.bfloat16, atol=5e-2, rtol=5e-2)

    print("KERNEL_OK")
</pallas_src>

<mosaic_0001>
module attributes {stable_mosaic.version = 11 : i64} {
  func.func @_local_fc_kernel(%arg0: i32, %arg1: memref<1x4x384xf32, #tpu.memory_space<vmem>>, %arg2: memref<144x384xf32, #tpu.memory_space<vmem>>, %arg3: memref<4x384xf32, #tpu.memory_space<vmem>>, %arg4: memref<1x4x384xf32, #tpu.memory_space<vmem>>) attributes {dimension_semantics = [#tpu.dimension_semantics<parallel>], iteration_bounds = array<i64: 2>, scalar_prefetch = 0 : i64, scratch_operands = 0 : i64, tpu.core_type = #tpu.core_type<tc>, window_params = [{transform_indices = @transform_0, window_bounds = array<i64: 1, 4, 384>}, {pipeline_mode = #tpu.pipeline_mode<synchronous>, transform_indices = @transform_1, window_bounds = array<i64: 144, 384>}, {pipeline_mode = #tpu.pipeline_mode<synchronous>, transform_indices = @transform_2, window_bounds = array<i64: 4, 384>}, {transform_indices = @transform_3, window_bounds = array<i64: 1, 4, 384>}]} {
    %c0 = arith.constant 0 : index
    %c0_0 = arith.constant 0 : index
    %c0_1 = arith.constant 0 : index
    %0 = vector.load %arg1[%c0, %c0_0, %c0_1] : memref<1x4x384xf32, #tpu.memory_space<vmem>>, vector<1x1x384xf32>
    %1 = vector.shape_cast %0 : vector<1x1x384xf32> to vector<1x384xf32>
    %c0_2 = arith.constant 0 : index
    %c1 = arith.constant 1 : index
    %c0_3 = arith.constant 0 : index
    %2 = vector.load %arg1[%c0_2, %c1, %c0_3] : memref<1x4x384xf32, #tpu.memory_space<vmem>>, vector<1x1x384xf32>
    %3 = vector.shape_cast %2 : vector<1x1x384xf32> to vector<1x384xf32>
    %c0_4 = arith.constant 0 : index
    %c2 = arith.constant 2 : index
    %c0_5 = arith.constant 0 : index
    %4 = vector.load %arg1[%c0_4, %c2, %c0_5] : memref<1x4x384xf32, #tpu.memory_space<vmem>>, vector<1x1x384xf32>
    %5 = vector.shape_cast %4 : vector<1x1x384xf32> to vector<1x384xf32>
    %c0_6 = arith.constant 0 : index
    %c3 = arith.constant 3 : index
    %c0_7 = arith.constant 0 : index
    %6 = vector.load %arg1[%c0_6, %c3, %c0_7] : memref<1x4x384xf32, #tpu.memory_space<vmem>>, vector<1x1x384xf32>
    %7 = vector.shape_cast %6 : vector<1x1x384xf32> to vector<1x384xf32>
    %c0_8 = arith.constant 0 : index
    %c0_9 = arith.constant 0 : index
    %8 = vector.load %arg2[%c0_8, %c0_9] : memref<144x384xf32, #tpu.memory_space<vmem>>, vector<4x384xf32>
    %9 = vector.broadcast %1 : vector<1x384xf32> to vector<4x384xf32>
    %10 = arith.mulf %9, %8 : vector<4x384xf32>
    %c4 = arith.constant 4 : index
    %c0_10 = arith.constant 0 : index
    %11 = vector.load %arg2[%c4, %c0_10] : memref<144x384xf32, #tpu.memory_space<vmem>>, vector<4x384xf32>
    %12 = vector.broadcast %3 : vector<1x384xf32> to vector<4x384xf32>
    %13 = arith.mulf %12, %11 : vector<4x384xf32>
    %14 = arith.addf %10, %13 : vector<4x384xf32>
    %c8 = arith.constant 8 : index
    %c0_11 = arith.constant 0 : index
    %15 = vector.load %arg2[%c8, %c0_11] : memref<144x384xf32, #tpu.memory_space<vmem>>, vector<4x384xf32>
    %16 = vector.broadcast %5 : vector<1x384xf32> to vector<4x384xf32>
    %17 = arith.mulf %16, %15 : vector<4x384xf32>
    %18 = arith.addf %14, %17 : vector<4x384xf32>
    %c12 = arith.constant 12 : index
    %c0_12 = arith.constant 0 : index
    %19 = vector.load %arg2[%c12, %c0_12] : memref<144x384xf32, #tpu.memory_space<vmem>>, vector<4x384xf32>
    %20 = vector.broadcast %7 : vector<1x384xf32> to vector<4x384xf32>
    %21 = arith.mulf %20, %19 : vector<4x384xf32>
    %22 = arith.addf %18, %21 : vector<4x384xf32>
    %c16 = arith.constant 16 : index
    %c0_13 = arith.constant 0 : index
    %23 = vector.load %arg2[%c16, %c0_13] : memref<144x384xf32, #tpu.memory_space<vmem>>, vector<4x384xf32>
    %24 = vector.broadcast %1 : vector<1x384xf32> to vector<4x384xf32>
    %25 = arith.mulf %24, %23 : vector<4x384xf32>
    %c20 = arith.constant 20 : index
    %c0_14 = arith.constant 0 : index
    %26 = vector.load %arg2[%c20, %c0_14] : memref<144x384xf32, #tpu.memory_space<vmem>>, vector<4x384xf32>
    %27 = vector.broadcast %3 : vector<1x384xf32> to vector<4x384xf32>
    %28 = arith.mulf %27, %26 : vector<4x384xf32>
    %29 = arith.addf %25, %28 : vector<4x384xf32>
    %c24 = arith.constant 24 : index
    %c0_15 = arith.constant 0 : index
    %30 = vector.load %arg2[%c24, %c0_15] : memref<144x384xf32, #tpu.memory_space<vmem>>, vector<4x384xf32>
    %31 = vector.broadcast %5 : vector<1x384xf32> to vector<4x384xf32>
    %32 = arith.mulf %31, %30 : vector<4x384xf32>
    %33 = arith.addf %29, %32 : vector<4x384xf32>
    %c28 = arith.constant 28 : index
    %c0_16 = arith.constant 0 : index
    %34 = vector.load %arg2[%c28, %c0_16] : memref<144x384xf32, #tpu.memory_space<vmem>>, vector<4x384xf32>
    %35 = vector.broadcast %7 : vector<1x384xf32> to vector<4x384xf32>
    %36 = arith.mulf %35, %34 : vector<4x384xf32>
    %37 = arith.addf %33, %36 : vector<4x384xf32>
    %c1_i32 = arith.constant 1 : i32
    %38 = tpu.dynamic_rotate %37 by %c1_i32 dim 1 : vector<4x384xf32>, i32 -> vector<4x384xf32>
    %39 = arith.addf %22, %38 : vector<4x384xf32>
    %c32 = arith.constant 32 : index
    %c0_17 = arith.constant 0 : index
    %40 = vector.load %arg2[%c32, %c0_17] : memref<144x384xf32, #tpu.memory_space<vmem>>, vector<4x384xf32>
    %41 = vector.broadcast %1 : vector<1x384xf32> to vector<4x384xf32>
    %42 = arith.mulf %41, %40 : vector<4x384xf32>
    %c36 = arith.constant 36 : index
    %c0_18 = arith.constant 0 : index
    %43 = vector.load %arg2[%c36, %c0_18] : memref<144x384xf32, #tpu.memory_space<vmem>>, vector<4x384xf32>
    %44 = vector.broadcast %3 : vector<1x384xf32> to vector<4x384xf32>
    %45 = arith.mulf %44, %43 : vector<4x384xf32>
    %46 = arith.addf %42, %45 : vector<4x384xf32>
    %c40 = arith.constant 40 : index
    %c0_19 = arith.constant 0 : index
    %47 = vector.load %arg2[%c40, %c0_19] : memref<144x384xf32, #tpu.memory_space<vmem>>, vector<4x384xf32>
    %48 = vector.broadcast %5 : vector<1x384xf32> to vector<4x384xf32>
    %49 = arith.mulf %48, %47 : vector<4x384xf32>
    %50 = arith.addf %46, %49 : vector<4x384xf32>
    %c44 = arith.constant 44 : index
    %c0_20 = arith.constant 0 : index
    %51 = vector.load %arg2[%c44, %c0_20] : memref<144x384xf32, #tpu.memory_space<vmem>>, vector<4x384xf32>
    %52 = vector.broadcast %7 : vector<1x384xf32> to vector<4x384xf32>
    %53 = arith.mulf %52, %51 : vector<4x384xf32>
    %54 = arith.addf %50, %53 : vector<4x384xf32>
    %c2_i32 = arith.constant 2 : i32
    %55 = tpu.dynamic_rotate %54 by %c2_i32 dim 1 : vector<4x384xf32>, i32 -> vector<4x384xf32>
    %56 = arith.addf %39, %55 : vector<4x384xf32>
    %c48 = arith.constant 48 : index
    %c0_21 = arith.constant 0 : index
    %57 = vector.load %arg2[%c48, %c0_21] : memref<144x384xf32, #tpu.memory_space<vmem>>, vector<4x384xf32>
    %58 = vector.broadcast %1 : vector<1x384xf32> to vector<4x384xf32>
    %59 = arith.mulf %58, %57 : vector<4x384xf32>
    %c52 = arith.constant 52 : index
    %c0_22 = arith.constant 0 : index
    %60 = vector.load %arg2[%c52, %c0_22] : memref<144x384xf32, #tpu.memory_space<vmem>>, vector<4x384xf32>
    %61 = vector.broadcast %3 : vector<1x384xf32> to vector<4x384xf32>
    %62 = arith.mulf %61, %60 : vector<4x384xf32>
    %63 = arith.addf %59, %62 : vector<4x384xf32>
    %c56 = arith.constant 56 : index
    %c0_23 = arith.constant 0 : index
    %64 = vector.load %arg2[%c56, %c0_23] : memref<144x384xf32, #tpu.memory_space<vmem>>, vector<4x384xf32>
    %65 = vector.broadcast %5 : vector<1x384xf32> to vector<4x384xf32>
    %66 = arith.mulf %65, %64 : vector<4x384xf32>
    %67 = arith.addf %63, %66 : vector<4x384xf32>
    %c60 = arith.constant 60 : index
    %c0_24 = arith.constant 0 : index
    %68 = vector.load %arg2[%c60, %c0_24] : memref<144x384xf32, #tpu.memory_space<vmem>>, vector<4x384xf32>
    %69 = vector.broadcast %7 : vector<1x384xf32> to vector<4x384xf32>
    %70 = arith.mulf %69, %68 : vector<4x384xf32>
    %71 = arith.addf %67, %70 : vector<4x384xf32>
    %c18_i32 = arith.constant 18 : i32
    %72 = tpu.dynamic_rotate %71 by %c18_i32 dim 1 : vector<4x384xf32>, i32 -> vector<4x384xf32>
    %73 = arith.addf %56, %72 : vector<4x384xf32>
    %c64 = arith.constant 64 : index
    %c0_25 = arith.constant 0 : index
    %74 = vector.load %arg2[%c64, %c0_25] : memref<144x384xf32, #tpu.memory_space<vmem>>, vector<4x384xf32>
    %75 = vector.broadcast %1 : vector<1x384xf32> to vector<4x384xf32>
    %76 = arith.mulf %75, %74 : vector<4x384xf32>
    %c68 = arith.constant 68 : index
    %c0_26 = arith.constant 0 : index
    %77 = vector.load %arg2[%c68, %c0_26] : memref<144x384xf32, #tpu.memory_space<vmem>>, vector<4x384xf32>
    %78 = vector.broadcast %3 : vector<1x384xf32> to vector<4x384xf32>
    %79 = arith.mulf %78, %77 : vector<4x384xf32>
    %80 = arith.addf %76, %79 : vector<4x384xf32>
    %c72 = arith.constant 72 : index
    %c0_27 = arith.constant 0 : index
    %81 = vector.load %arg2[%c72, %c0_27] : memref<144x384xf32, #tpu.memory_space<vmem>>, vector<4x384xf32>
    %82 = vector.broadcast %5 : vector<1x384xf32> to vector<4x384xf32>
    %83 = arith.mulf %82, %81 : vector<4x384xf32>
    %84 = arith.addf %80, %83 : vector<4x384xf32>
    %c76 = arith.constant 76 : index
    %c0_28 = arith.constant 0 : index
    %85 = vector.load %arg2[%c76, %c0_28] : memref<144x384xf32, #tpu.memory_space<vmem>>, vector<4x384xf32>
    %86 = vector.broadcast %7 : vector<1x384xf32> to vector<4x384xf32>
    %87 = arith.mulf %86, %85 : vector<4x384xf32>
    %88 = arith.addf %84, %87 : vector<4x384xf32>
    %c19_i32 = arith.constant 19 : i32
    %89 = tpu.dynamic_rotate %88 by %c19_i32 dim 1 : vector<4x384xf32>, i32 -> vector<4x384xf32>
    %90 = arith.addf %73, %89 : vector<4x384xf32>
    %c80 = arith.constant 80 : index
    %c0_29 = arith.constant 0 : index
    %91 = vector.load %arg2[%c80, %c0_29] : memref<144x384xf32, #tpu.memory_space<vmem>>, vector<4x384xf32>
    %92 = vector.broadcast %1 : vector<1x384xf32> to vector<4x384xf32>
    %93 = arith.mulf %92, %91 : vector<4x384xf32>
    %c84 = arith.constant 84 : index
    %c0_30 = arith.constant 0 : index
    %94 = vector.load %arg2[%c84, %c0_30] : memref<144x384xf32, #tpu.memory_space<vmem>>, vector<4x384xf32>
    %95 = vector.broadcast %3 : vector<1x384xf32> to vector<4x384xf32>
    %96 = arith.mulf %95, %94 : vector<4x384xf32>
    %97 = arith.addf %93, %96 : vector<4x384xf32>
    %c88 = arith.constant 88 : index
    %c0_31 = arith.constant 0 : index
    %98 = vector.load %arg2[%c88, %c0_31] : memref<144x384xf32, #tpu.memory_space<vmem>>, vector<4x384xf32>
    %99 = vector.broadcast %5 : vector<1x384xf32> to vector<4x384xf32>
    %100 = arith.mulf %99, %98 : vector<4x384xf32>
    %101 = arith.addf %97, %100 : vector<4x384xf32>
    %c92 = arith.constant 92 : index
    %c0_32 = arith.constant 0 : index
    %102 = vector.load %arg2[%c92, %c0_32] : memref<144x384xf32, #tpu.memory_space<vmem>>, vector<4x384xf32>
    %103 = vector.broadcast %7 : vector<1x384xf32> to vector<4x384xf32>
    %104 = arith.mulf %103, %102 : vector<4x384xf32>
    %105 = arith.addf %101, %104 : vector<4x384xf32>
    %c20_i32 = arith.constant 20 : i32
    %106 = tpu.dynamic_rotate %105 by %c20_i32 dim 1 : vector<4x384xf32>, i32 -> vector<4x384xf32>
    %107 = arith.addf %90, %106 : vector<4x384xf32>
    %c96 = arith.constant 96 : index
    %c0_33 = arith.constant 0 : index
    %108 = vector.load %arg2[%c96, %c0_33] : memref<144x384xf32, #tpu.memory_space<vmem>>, vector<4x384xf32>
    %109 = vector.broadcast %1 : vector<1x384xf32> to vector<4x384xf32>
    %110 = arith.mulf %109, %108 : vector<4x384xf32>
    %c100 = arith.constant 100 : index
    %c0_34 = arith.constant 0 : index
    %111 = vector.load %arg2[%c100, %c0_34] : memref<144x384xf32, #tpu.memory_space<vmem>>, vector<4x384xf32>
    %112 = vector.broadcast %3 : vector<1x384xf32> to vector<4x384xf32>
    %113 = arith.mulf %112, %111 : vector<4x384xf32>
    %114 = arith.addf %110, %113 : vector<4x384xf32>
    %c104 = arith.constant 104 : index
    %c0_35 = arith.constant 0 : index
    %115 = vector.load %arg2[%c104, %c0_35] : memref<144x384xf32, #tpu.memory_space<vmem>>, vector<4x384xf32>
    %116 = vector.broadcast %5 : vector<1x384xf32> to vector<4x384xf32>
    %117 = arith.mulf %116, %115 : vector<4x384xf32>
    %118 = arith.addf %114, %117 : vector<4x384xf32>
    %c108 = arith.constant 108 : index
    %c0_36 = arith.constant 0 : index
    %119 = vector.load %arg2[%c108, %c0_36] : memref<144x384xf32, #tpu.memory_space<vmem>>, vector<4x384xf32>
    %120 = vector.broadcast %7 : vector<1x384xf32> to vector<4x384xf32>
    %121 = arith.mulf %120, %119 : vector<4x384xf32>
    %122 = arith.addf %118, %121 : vector<4x384xf32>
    %c36_i32 = arith.constant 36 : i32
    %123 = tpu.dynamic_rotate %122 by %c36_i32 dim 1 : vector<4x384xf32>, i32 -> vector<4x384xf32>
    %124 = arith.addf %107, %123 : vector<4x384xf32>
    %c112 = arith.constant 112 : index
    %c0_37 = arith.constant 0 : index
    %125 = vector.load %arg2[%c112, %c0_37] : memref<144x384xf32, #tpu.memory_space<vmem>>, vector<4x384xf32>
    %126 = vector.broadcast %1 : vector<1x384xf32> to vector<4x384xf32>
    %127 = arith.mulf %126, %125 : vector<4x384xf32>
    %c116 = arith.constant 116 : index
    %c0_38 = arith.constant 0 : index
    %128 = vector.load %arg2[%c116, %c0_38] : memref<144x384xf32, #tpu.memory_space<vmem>>, vector<4x384xf32>
    %129 = vector.broadcast %3 : vector<1x384xf32> to vector<4x384xf32>
    %130 = arith.mulf %129, %128 : vector<4x384xf32>
    %131 = arith.addf %127, %130 : vector<4x384xf32>
    %c120 = arith.constant 120 : index
    %c0_39 = arith.constant 0 : index
    %132 = vector.load %arg2[%c120, %c0_39] : memref<144x384xf32, #tpu.memory_space<vmem>>, vector<4x384xf32>
    %133 = vector.broadcast %5 : vector<1x384xf32> to vector<4x384xf32>
    %134 = arith.mulf %133, %132 : vector<4x384xf32>
    %135 = arith.addf %131, %134 : vector<4x384xf32>
    %c124 = arith.constant 124 : index
    %c0_40 = arith.constant 0 : index
    %136 = vector.load %arg2[%c124, %c0_40] : memref<144x384xf32, #tpu.memory_space<vmem>>, vector<4x384xf32>
    %137 = vector.broadcast %7 : vector<1x384xf32> to vector<4x384xf32>
    %138 = arith.mulf %137, %136 : vector<4x384xf32>
    %139 = arith.addf %135, %138 : vector<4x384xf32>
    %c37_i32 = arith.constant 37 : i32
    %140 = tpu.dynamic_rotate %139 by %c37_i32 dim 1 : vector<4x384xf32>, i32 -> vector<4x384xf32>
    %141 = arith.addf %124, %140 : vector<4x384xf32>
    %c128 = arith.constant 128 : index
    %c0_41 = arith.constant 0 : index
    %142 = vector.load %arg2[%c128, %c0_41] : memref<144x384xf32, #tpu.memory_space<vmem>>, vector<4x384xf32>
    %143 = vector.broadcast %1 : vector<1x384xf32> to vector<4x384xf32>
    %144 = arith.mulf %143, %142 : vector<4x384xf32>
    %c132 = arith.constant 132 : index
    %c0_42 = arith.constant 0 : index
    %145 = vector.load %arg2[%c132, %c0_42] : memref<144x384xf32, #tpu.memory_space<vmem>>, vector<4x384xf32>
    %146 = vector.broadcast %3 : vector<1x384xf32> to vector<4x384xf32>
    %147 = arith.mulf %146, %145 : vector<4x384xf32>
    %148 = arith.addf %144, %147 : vector<4x384xf32>
    %c136 = arith.constant 136 : index
    %c0_43 = arith.constant 0 : index
    %149 = vector.load %arg2[%c136, %c0_43] : memref<144x384xf32, #tpu.memory_space<vmem>>, vector<4x384xf32>
    %150 = vector.broadcast %5 : vector<1x384xf32> to vector<4x384xf32>
    %151 = arith.mulf %150, %149 : vector<4x384xf32>
    %152 = arith.addf %148, %151 : vector<4x384xf32>
    %c140 = arith.constant 140 : index
    %c0_44 = arith.constant 0 : index
    %153 = vector.load %arg2[%c140, %c0_44] : memref<144x384xf32, #tpu.memory_space<vmem>>, vector<4x384xf32>
    %154 = vector.broadcast %7 : vector<1x384xf32> to vector<4x384xf32>
    %155 = arith.mulf %154, %153 : vector<4x384xf32>
    %156 = arith.addf %152, %155 : vector<4x384xf32>
    %c38_i32 = arith.constant 38 : i32
    %157 = tpu.dynamic_rotate %156 by %c38_i32 dim 1 : vector<4x384xf32>, i32 -> vector<4x384xf32>
    %158 = arith.addf %141, %157 : vector<4x384xf32>
    %c0_45 = arith.constant 0 : index
    %c0_46 = arith.constant 0 : index
    %159 = vector.load %arg3[%c0_45, %c0_46] : memref<4x384xf32, #tpu.memory_space<vmem>>, vector<4x384xf32>
    %160 = arith.addf %158, %159 : vector<4x384xf32>
    %c0_47 = arith.constant 0 : index
    %c0_48 = arith.constant 0 : index
    %c0_49 = arith.constant 0 : index
    %161 = vector.load %arg4[%c0_47, %c0_48, %c0_49] : memref<1x4x384xf32, #tpu.memory_space<vmem>>, vector<1x4x384xf32>
    %162 = vector.shape_cast %161 : vector<1x4x384xf32> to vector<4x384xf32>
    %163 = vector.shape_cast %160 : vector<4x384xf32> to vector<1x4x384xf32>
    tpu.vector_store %arg4[%c0_47, %c0_48, %c0_49], %163 {strides = array<i32>} : memref<1x4x384xf32, #tpu.memory_space<vmem>>, vector<1x4x384xf32>,
    return
  }
  func.func @transform_0(%arg0: i32) -> (i32, i32, i32) {
    %c0_i32 = arith.constant 0 : i32
    %c0_i32_0 = arith.constant 0 : i32
    %c0_i32_1 = arith.constant 0 : i32
    return %arg0, %c0_i32, %c0_i32_0 : i32, i32, i32
  }
  func.func @transform_1(%arg0: i32) -> (i32, i32) {
    %c0_i32 = arith.constant 0 : i32
    %c0_i32_0 = arith.constant 0 : i32
    %c0_i32_1 = arith.constant 0 : i32
    return %c0_i32, %c0_i32_0 : i32, i32
  }
  func.func @transform_2(%arg0: i32) -> (i32, i32) {
    %c0_i32 = arith.constant 0 : i32
    %c0_i32_0 = arith.constant 0 : i32
    %c0_i32_1 = arith.constant 0 : i32
    return %c0_i32, %c0_i32_0 : i32, i32
  }
  func.func @transform_3(%arg0: i32) -> (i32, i32, i32) {
    %c0_i32 = arith.constant 0 : i32
    %c0_i32_0 = arith.constant 0 : i32
    %c0_i32_1 = arith.constant 0 : i32
    return %arg0, %c0_i32, %c0_i32_0 : i32, i32, i32
  }
}

</mosaic_0001>

<bundles_post_ra>
// kernel: tpu_custom_call.1
= control target key start
LH: loop header
LB: loop body
LE: loop exit
PB: predicated region body
PF: predicated region fallthrough
CT: control target
= control target key end

     0   :  { %8 = vsyncpa [#allocation3], 0  ;;  %s1658_s0 = inlined_call_operand.hbm [shape: f32[2,4,384], index: 0, kind: input, shape index: {}]   ;;  %s1659_s1 = inlined_call_operand.hbm [shape: f32[144,384], index: 1, kind: input, shape index: {}]   ;;  %s1660_s2 = inlined_call_operand.hbm [shape: f32[4,384], index: 2, kind: input, shape index: {}]   ;;  %s1661_s3 = inlined_call_operand.hbm [shape: f32[2,4,384], index: 3, kind: output, shape index: {}]  }
   0x1   :  { %10 = vsyncpa [#allocation3 + $0x1], 0 }
   0x2   :  { %11 = vsyncpa [#allocation6], 0 }
   0x3   :  { %12 = vsyncpa [#allocation4], 0 }
   0x4   :  { %14 = vsyncpa [#allocation4 + $0x1], 0  ;;  %s1257_s12 = smov 0   ;;  %s1259_s13 = smov 0  }
   0x5   :  { %s1261_s14 = smov 0   ;;  %s1263_s15 = smov 0  }
   0x6 LB: > { %s1278_s16 = sadd.s32 4294967295, %s1221_s15   ;;  %s968_s17 = sadd.s32 4294967294, %s1221_s15   ;;  %s1221_s15 = sphi %s1263_s15, %s1681_s15   ;;  %s1217_s14 = sphi %s1261_s14, %s1680_s14   ;;  %s1213_s13 = sphi %s1259_s13, %s1679_s13   ;;  %s1209_s12 = sphi %s1257_s12, %s1678_s12  }
   0x7   : > { %p40_p0 = scmp.ne.s32.totalorder %s1213_s13, %s1209_s12  ;;  %p1662_p1 = scmp.eq.s32.totalorder %s1278_s16, 0 }
   0x8   : > { %p112_p3 = scmp.eq.s32.totalorder %s968_s17, 1  ;;  %p969_p5 = scmp.ge.s32.totalorder %s1221_s15, 1 }
   0x9   : > { %p1287_p4 = por %p1662_p1, %p40_p0  ;;  %p119_p7 = scmp.lt.s32.totalorder %s1221_s15, 3 }
   0xa   : > { %p1292_p6 = por %p112_p3, %p40_p0  ;;  %s1223_s21 = smov [#allocation5]  }
   0xb   : > { %s1665_s18 = scalar_select %p1287_p4, 1, 0 }
   0xc   : > { %s1666_s19 = scalar_select %p1292_p6, 1, 0 }
   0xd   : > { %p1297_p8 = pnand %p969_p5, %p119_p7  ;;  %s131_s22 = sshll.u32 %s1223_s21, 4  ;;  %s1301_s22 = int_to_ptr.vmem [resolvable:$true] %s131_s22 }
   0xe   : > { %s1224_s24 = smov [#allocation7]   ;;  %s1065_s28 = scalar_lea.hbm %s1659_s1, 6912 }
   0xf   : > { %p999_p9 = pneg %p1297_p8  ;;  %s145_s25 = sshll.u32 %s1224_s24, 4  ;;  %s1312_s25 = int_to_ptr.vmem [resolvable:$true] %s145_s25 }
  0x10   : > { %p1066_p12 = scmp.ne.s32.totalorder %s1659_s1, %s1065_s28  ;;  %p1072_p5 = scmp.lt.u32.totalorder %s1065_s28, %s1659_s1 }
  0x11   : > { %p1308_p11 = pnand %p999_p9, %p1662_p1 }
  0x13   : > { %p1067_p13 = pneg %p1308_p11 }
  0x15   : > { %p1068_p0 = pnand %p1067_p13, %p1066_p12 }
  0x17   : > { %p1069_p3 = pneg %p1068_p0 }
  0x19   : > { %p1074_p7 = pnand %p1072_p5, %p1069_p3 }
  0x1b   : > { %1077 = shalt.err (!%p1074_p7)
}
  0x1c   : > { %s1078_s6 = scalar_lea.vmem %s1301_s22, 6912  ;;  %p1086_p2 = scmp.lt.s32.totalorder %s1301_s22, %s1301_s22 }
  0x1d   : > { %p1079_p9 = scmp.ne.s32.totalorder %s1301_s22, %s1078_s6  ;;  %p1087_p12 = scmp.lt.s32.totalorder %s1078_s6, %s1078_s6 }
  0x1f   : > { %p1081_p10 = pnand %p1079_p9, %p1067_p13  ;;  %p1088_p0 = por %p1087_p12, %p1086_p2 }
  0x21   : > { %p1082_p1 = pneg %p1081_p10 }
  0x23   : > { %p1089_p6 = pnand %p1088_p0, %p1082_p1 }
  0x25   : > { %1092 = shalt.err (!%p1089_p6)
}
  0x26   : > { %s1225_s7 = smov 384   ;;  %s1226_s8 = smov 24  }
  0x27   : > { %1002 = dma.hbm_to_vmem [thread:$0]  (!%p1308_p11), %s1659_s1, 6912, %s1301_s22, [#allocation6], %s1225_s7, %s1225_s7, %s1226_s8  }
  0x28   : > { %s1093_s21 = scalar_lea.hbm %s1660_s2, 192 }
  0x29   : > { %p1094_p2 = scmp.ne.s32.totalorder %s1660_s2, %s1093_s21  ;;  %p1100_p10 = scmp.lt.u32.totalorder %s1093_s21, %s1660_s2 }
  0x2b   : > { %p1096_p1 = pnand %p1094_p2, %p1067_p13 }
  0x2d   : > { %p1097_p6 = pneg %p1096_p1 }
  0x2f   : > { %p1102_p3 = pnand %p1100_p10, %p1097_p6 }
  0x31   : > { %1105 = shalt.err (!%p1102_p3)
}
  0x32   : > { %s1106_s22 = scalar_lea.vmem %s1312_s25, 192  ;;  %p1114_p12 = scmp.lt.s32.totalorder %s1312_s25, %s1312_s25 }
  0x33   : > { %p1107_p5 = scmp.ne.s32.totalorder %s1312_s25, %s1106_s22  ;;  %p1115_p0 = scmp.lt.s32.totalorder %s1106_s22, %s1106_s22 }
  0x35   : > { %p1109_p7 = pnand %p1107_p5, %p1067_p13  ;;  %p1116_p2 = por %p1115_p0, %p1114_p12 }
  0x37   : > { %p1110_p9 = pneg %p1109_p7 }
  0x39   : > { %p1117_p1 = pnand %p1116_p2, %p1110_p9 }
  0x3b   : > { %1120 = shalt.err (!%p1117_p1)
}
  0x3c   : > { %1005 = dma.hbm_to_vmem [thread:$0]  (!%p1308_p11), %s1660_s2, 192, %s1312_s25, [#allocation6]  }
  0x3d   : > { %s1367_s4 = sadd.s32 1, %s1221_s15   ;;  %s27_s23 = sadd.s32 1, %s1217_s14 }
  0x3e   : > { %s24_s5 = ssub.s32 %s1221_s15, %s1367_s4  ;;  %p34_p13 = scmp.ne.s32.totalorder %s1217_s14, %s1213_s13 }
  0x3f   : > { %p25_p6 = scmp.eq.s32.totalorder %s24_s5, 0  ;;  %p35_p10 = scmp.eq.s32.totalorder %s1221_s15, 0 }
  0x40   : > { %p1669_p3 = scmp.eq.s32.totalorder %s1278_s16, 1  ;;  %p1016_p7 = scmp.lt.s32.totalorder %s1221_s15, 2 }
  0x41   : > { %s1383_s7 = scalar_select %p25_p6, %s1217_s14, %s27_s23  }
  0x42   : > { %p1377_p5 = por %p1669_p3, %p34_p13  ;;  %p36_p9 = por %p35_p10, %p34_p13 }
  0x43   : > { %s156_s8 = sand.u32 1, %s1217_s14   ;;  %s984_s25 = smul.u32 192, %s1221_s15 }
  0x44   : > { %s1670_s6 = scalar_select %p1377_p5, 1, 0 }
  0x45   : > { %s983_s9 = smul.u32 12, %s156_s8  ;;  %p1387_p11 = pnand %p1016_p7, %p36_p9 }
  0x46   : > { %s1394_s21 = scalar_lea.hbm %s1658_s0, %s984_s25  ;;  %s157_s27 = scalar_lea.sflag [#allocation3], %s156_s8 }
  0x47   : > { %s160_s24 = scalar_lea.vmem [#allocation2], %s983_s9  ;;  %s1121_s28 = scalar_lea.hbm %s1394_s21, 192 }
  0x48   : > { %s168_s26 = sshll.u32 %s160_s24, 4  ;;  %p1122_p12 = scmp.ne.s32.totalorder %s1394_s21, %s1121_s28  ;;  %s1396_s26 = int_to_ptr.vmem [resolvable:$true] %s168_s26 }
  0x49   : > { %p1123_p0 = pneg %p1387_p11  ;;  %s1126_s30 = scalar_lea.hbm %s1658_s0, 384 }
  0x4a   : > { %p1127_p13 = scmp.lt.u32.totalorder %s1394_s21, %s1658_s0  ;;  %p1128_p6 = scmp.lt.u32.totalorder %s1126_s30, %s1121_s28 }
  0x4b   : > { %p1124_p2 = pnand %p1123_p0, %p1122_p12  ;;  %p1130_p3 = scmp.lt.u32.totalorder %s1121_s28, %s1394_s21 }
  0x4c   : > { %p1129_p10 = por %p1128_p6, %p1127_p13 }
  0x4d   : > { %p1125_p1 = pneg %p1124_p2 }
  0x4e   : > { %p1131_p7 = por %p1130_p3, %p1129_p10 }
  0x50   : > { %p1132_p9 = pnand %p1131_p7, %p1125_p1 }
  0x52   : > { %1135 = shalt.err (!%p1132_p9)
}
  0x53   : > { %s1136_s8 = scalar_lea.vmem %s1396_s26, 192  ;;  %s1227_s9 = smov [#allocation2]  }
  0x54   : > { %p1137_p12 = scmp.ne.s32.totalorder %s1396_s26, %s1136_s8  ;;  %s1141_s25 = sshll.u32 %s1227_s9, 4  ;;  %s1142_s25 = int_to_ptr.vmem [resolvable:$false] %s1141_s25 }
  0x55   : > { %s1143_s11 = scalar_lea.vmem %s1142_s25, 384  ;;  %p1144_p4 = scmp.lt.s32.totalorder %s1396_s26, %s1142_s25 }
  0x56   : > { %p1139_p2 = pnand %p1137_p12, %p1123_p0  ;;  %p1145_p13 = scmp.lt.s32.totalorder %s1143_s11, %s1136_s8 }
  0x58   : > { %p1140_p5 = pneg %p1139_p2  ;;  %p1146_p6 = por %p1145_p13, %p1144_p4 }
  0x5a   : > { %p1147_p10 = pnand %p1146_p6, %p1140_p5 }
  0x5c   : > { %1150 = shalt.err (!%p1147_p10)
}
  0x5d   : > { %1009 = dma.hbm_to_vmem [thread:$0]  (!%p1387_p11), %s1394_s21, 192, %s1396_s26, %s157_s27  }
  0x5e   : > { %177 = sbr.rel (%p1297_p8) target bundleno = 310 (0x136), region = 32  ;;  %s1426_s17 = sand.u32 (!%p1297_p8), 1, %s1213_s13  }
  0x5f   : > { %s985_s24 = smul.u32 (!%p1297_p8), 12, %s1426_s17  ;;  %s180_s28 = scalar_lea.sflag (!%p1297_p8), [#allocation3], %s1426_s17 }
  0x60   : > { %p1672_p4 = scmp.ne.s32.totalorder (!%p1297_p8), %s1665_s18, 0 }
  0x61   : > { %s183_s22 = scalar_lea.vmem (!%p1297_p8), [#allocation2], %s985_s24 }
  0x65   : > { %1196 = dma.done.wait (%p1672_p4), %s180_s28, 192  }
  0x66   : > { %1198 = vsyncadd (%p1672_p4), %s180_s28, 4294967104  ;;  %p1673_p5 = scmp.eq.s32.totalorder %s1278_s16, 0 }
  0x68   : > { %1200 = dma.done.wait (%p1673_p5), [#allocation6], 7104   ;;  %p1674_p8 = pmov %p1673_p5 }
  0x69   : > { %v225_v0 = vlaneseq  ;;  %v214_v5 = vld [vmem:[%s183_s22] ss:$4 sm:$0x7]  ;;  %v977_v6 = vld [vmem:[%s183_s22 + $0x1] ss:$4 sm:$0x7] }
  0x6a   : > { %1202 = vsyncadd (%p1674_p8), [#allocation6], 4294960192  ;;  %v978_v7 = vld [vmem:[%s183_s22 + $0x2] ss:$4 sm:$0x7]  ;;  %s1228_s18 = smov 1  }
  0x6b   : > { %v226_v1 = vshrl.u32 %v225_v0, 7  ;;  %v979_v8 = vld [vmem:[%s183_s22 + $0x3] ss:$4 sm:$0x7]  ;;  %v338_v15 = vld [vmem:[#allocation5 + $0x40] sm:$0xf] }
  0x6c   : > { %v344_v16 = vld [vmem:[#allocation5 + $0x40] sm:$0xf0]  ;;  %v362_v17 = vld [vmem:[#allocation5 + $0x58] sm:$0xf]  ;;  %v371_v22 = vld [vmem:[#allocation5 + $0x58] sm:$0xf0] }
  0x6d   : > { %v235_v2 = vsub.s32 2, %v226_v1  ;;  %v227_v3 = vsub.s32 0, %v226_v1  ;;  %v231_v4 = vsub.s32 1, %v226_v1  ;;  %v336_v23 = vld [vmem:[#allocation5 + $0x30] sm:$0xf]  ;;  %s1229_s20 = smov 2  }
  0x6e   : > { %v342_v24 = vld [vmem:[#allocation5 + $0x30] sm:$0xf0]  ;;  %v360_v31 = vld [vmem:[#allocation5 + $0x48] sm:$0xf]  ;;  %v369_v32 = vld [vmem:[#allocation5 + $0x48] sm:$0xf0] }
  0x6f   : > { %v1441_v9 = vrot.slane %v214_v5, %v235_v2  ;;  %v1443_v10 = vrot.slane %v977_v6, %v235_v2  ;;  %v1445_v11 = vrot.slane %v214_v5, %v227_v3  ;;  %v1447_v12 = vrot.slane %v977_v6, %v227_v3  ;;  %v402_v33 = vld [vmem:[#allocation5 + $0x60] sm:$0xf]  ;;  %v408_v38 = vld [vmem:[#allocation5 + $0x60] sm:$0xf0]  ;;  %v426_v39 = vld [vmem:[#allocation5 + $0x78] sm:$0xf] }
  0x70   : > { %v1449_v13 = vrot.slane %v978_v7, %v235_v2  ;;  %v1451_v14 = vrot.slane %v979_v8, %v235_v2  ;;  %v1453_v18 = vrot.slane %v978_v7, %v227_v3  ;;  %v1455_v19 = vrot.slane %v979_v8, %v227_v3  ;;  %v435_v44 = vld [vmem:[#allocation5 + $0x78] sm:$0xf0]  ;;  %v337_v45 = vld [vmem:[#allocation5 + $0x38] sm:$0xf]  ;;  %v361_v51 = vld [vmem:[#allocation5 + $0x50] sm:$0xf] }
  0x71   : > { %v341_v20 = vmul.f32 %v338_v15, %v1441_v9  ;;  %v347_v21 = vmul.f32 %v344_v16, %v1443_v10  ;;  %v1459_v25 = vrot.slane %v214_v5, %v231_v4  ;;  %v1461_v26 = vrot.slane %v977_v6, %v231_v4  ;;  %v343_v50 = vld [vmem:[#allocation5 + $0x38] sm:$0xf0]  ;;  %v370_v56 = vld [vmem:[#allocation5 + $0x50] sm:$0xf0]  ;;  %v404_v57 = vld [vmem:[#allocation5 + $0x70] sm:$0xf] }
  0x72   : > { %v365_v27 = vmul.f32 %v362_v17, %v1449_v13  ;;  %v374_v28 = vmul.f32 %v371_v22, %v1451_v14  ;;  %v339_v29 = vmul.f32 %v336_v23, %v1445_v11  ;;  %v345_v30 = vmul.f32 %v342_v24, %v1447_v12  ;;  %v410_v62 = vld [vmem:[#allocation5 + $0x70] sm:$0xf0]  ;;  %v428_v63 = vld [vmem:[#allocation5 + $0x88] sm:$0xf]  ;;  %s1230_s10 = smov 18   ;;  %s1231_s21 = smov 19  }
  0x73   : > { %v353_v34 = vrot.slane %v347_v21, 4  ;;  %v363_v35 = vmul.f32 %v360_v31, %v1453_v18  ;;  %v372_v36 = vmul.f32 %v369_v32, %v1455_v19  ;;  %v405_v37 = vmul.f32 %v402_v33, %v1445_v11  ;;  %v403_v6 = vld [vmem:[#allocation5 + $0x68] sm:$0xf]  ;;  %v436_v21 = vld [vmem:[#allocation5 + $0x80] sm:$0xf0]  ;;  %s1232_s26 = smov 20  }
  0x74   : > { %v380_v40 = vrot.slane %v374_v28, 4  ;;  %v351_v41 = vrot.slane %v345_v30, 4  ;;  %v411_v42 = vmul.f32 %v408_v38, %v1447_v12  ;;  %v429_v43 = vmul.f32 %v426_v39, %v1453_v18  ;;  %v467_v28 = vld [vmem:[#allocation5 + $0x98] sm:$0xf]  ;;  %s1233_s27 = smov 36   ;;  %s1234_s29 = smov 37  }
  0x75   : > { %v359_v46 = vadd.f32 %v353_v34, %v341_v20  ;;  %v378_v47 = vrot.slane %v372_v36, 4  ;;  %v438_v48 = vmul.f32 %v435_v44, %v1455_v19  ;;  %v1473_v49 = vrot.slane %v978_v7, %v231_v4  ;;  %v409_v7 = vld [vmem:[#allocation5 + $0x68] sm:$0xf0]  ;;  %v427_v20 = vld [vmem:[#allocation5 + $0x80] sm:$0xf]  ;;  %s1235_s30 = smov 38  }
  0x76   : > { %v357_v52 = vadd.f32 %v351_v41, %v339_v29  ;;  %v417_v53 = vrot.slane %v411_v42, 4  ;;  %v1475_v54 = vrot.slane %v979_v8, %v231_v4  ;;  %v340_v55 = vmul.f32 %v337_v45, %v1459_v25  ;;  %v437_v4 = vld [vmem:[#allocation5 + $0x88] sm:$0xf0]  ;;  %v473_v29 = vld [vmem:[#allocation5 + $0x98] sm:$0xf0]  ;;  %s986_s23 = smul.u32 192, %s1278_s16 }
  0x77   : > { %v368_v58 = vadd.f32 %v365_v27, %v359_v46  ;;  %v444_v59 = vrot.slane %v438_v48, 4  ;;  %v346_v60 = vmul.f32 %v343_v50, %v1461_v26  ;;  %v364_v61 = vmul.f32 %v361_v51, %v1473_v49  ;;  %v491_v34 = vld [vmem:[#allocation5 + $0xb0] sm:$0xf]  ;;  %v472_v45 = vld [vmem:[#allocation5 + $0x90] sm:$0xf0]  ;;  %s213_s5 = scalar_lea.vmem [#allocation8], %s985_s24 }
  0x78   : > { %v366_v1 = vadd.f32 %v363_v35, %v357_v52  ;;  %v423_v2 = vadd.f32 %v417_v53, %v405_v37  ;;  %v373_v3 = vmul.f32 %v370_v56, %v1475_v54  ;;  %v407_v5 = vmul.f32 %v404_v57, %v1441_v9  ;;  %v500_v35 = vld [vmem:[#allocation5 + $0xb0] sm:$0xf0]  ;;  %v490_v46 = vld [vmem:[#allocation5 + $0xa8] sm:$0xf]  ;;  %v499_v52 = vld [vmem:[#allocation5 + $0xa8] sm:$0xf0]  ;;  %s1614_s11 = scalar_lea.hbm %s1661_s3, %s986_s23 }
  0x79   : > { %v386_v8 = vadd.f32 %v380_v40, %v368_v58  ;;  %v352_v15 = vrot.slane %v346_v60, 4  ;;  %v413_v16 = vmul.f32 %v410_v62, %v1443_v10  ;;  %v431_v17 = vmul.f32 %v428_v63, %v1449_v13  ;;  %v466_v40 = vld [vmem:[#allocation5 + $0x90] sm:$0xf]  ;;  %v530_v53 = vld [vmem:[#allocation5 + $0xc0] sm:$0xf]  ;;  %s879_s8 = sshll.u32 %s213_s5, 4  ;;  %s1616_s8 = int_to_ptr.vmem [resolvable:$true] %s879_s8 }
  0x7a   : > { %v384_v22 = vadd.f32 %v378_v47, %v366_v1  ;;  %v432_v23 = vadd.f32 %v429_v43, %v423_v2  ;;  %v379_v24 = vrot.slane %v373_v3, 4  ;;  %v440_v27 = vmul.f32 %v437_v4, %v1451_v14  ;;  %v554_v60 = vld [vmem:[#allocation5 + $0xd8] sm:$0xf]  ;;  %v563_v2 = vld [vmem:[#allocation5 + $0xd8] sm:$0xf0]  ;;  %s865_s28 = scalar_lea.sflag [#allocation4], %s1426_s17 }
  0x7b   : > { %391 = vrot.lane.b32.xlu1 %v386_v8, %s1228_s18  ;;  %v358_v30 = vadd.f32 %v352_v15, %v340_v55  ;;  %v419_v31 = vrot.slane %v413_v16, 4  ;;  %v406_v32 = vmul.f32 %v403_v6, %v1459_v25  ;;  %v412_v33 = vmul.f32 %v409_v7, %v1461_v26  ;;  %v468_v3 = vld [vmem:[#allocation5 + $0xa0] sm:$0xf]  ;;  %v474_v8 = vld [vmem:[#allocation5 + $0xa0] sm:$0xf0]  ;;  %s1151_s16 = scalar_lea.vmem %s1616_s8, 192 }
  0x7c   : > { %387 = vrot.lane.b32.xlu0 %v384_v22, %s1228_s18  ;;  %v450_v36 = vadd.f32 %v444_v59, %v432_v23  ;;  %v446_v37 = vrot.slane %v440_v27, 4  ;;  %v430_v38 = vmul.f32 %v427_v20, %v1473_v49  ;;  %v439_v39 = vmul.f32 %v436_v21, %v1475_v54  ;;  %v536_v59 = vld [vmem:[#allocation5 + $0xc0] sm:$0xf0]  ;;  %v492_v15 = vld [vmem:[#allocation5 + $0xb8] sm:$0xf]  ;;  %p1152_p11 = scmp.ne.s32.totalorder %s1616_s8, %s1151_s16  ;;  %p1675_p0 = scmp.ne.s32.totalorder %s1670_s6, 0 }
  0x7d   : > { %v367_v41 = vadd.f32 %v364_v61, %v358_v30  ;;  %v425_v42 = vadd.f32 %v419_v31, %v407_v5  ;;  %v418_v43 = vrot.slane %v412_v33, 4  ;;  %v470_v44 = vmul.f32 %v467_v28, %v1459_v25  ;;  %v501_v22 = vld [vmem:[#allocation5 + $0xb8] sm:$0xf0]  ;;  %v532_v23 = vld [vmem:[#allocation5 + $0xd0] sm:$0xf]  ;;  %s1236_s24 = smov [#allocation8]  }
  0x7e   : > { %v445_v47 = vrot.slane %v439_v39, 4  ;;  %v476_v48 = vmul.f32 %v473_v29, %v1461_v26  ;;  %v494_v50 = vmul.f32 %v491_v34, %v1473_v49  ;;  %v503_v51 = vmul.f32 %v500_v35, %v1475_v54  ;;  %v538_v30 = vld [vmem:[#allocation5 + $0xd0] sm:$0xf0]  ;;  %v556_v35 = vld [vmem:[#allocation5 + $0xe8] sm:$0xf]  ;;  %p1153_p1 = pnand %p1152_p11, %p1675_p0  ;;  %s1155_s22 = sshll.u32 %s1236_s24, 4  ;;  %s1156_s22 = int_to_ptr.vmem [resolvable:$false] %s1155_s22 }
  0x7f   : > { %453 = vrot.lane.b32.xlu1 %v450_v36, %s1229_s20  ;;  %v385_v55 = vadd.f32 %v379_v24, %v367_v41  ;;  %v434_v56 = vadd.f32 %v431_v17, %v425_v42  ;;  %v424_v57 = vadd.f32 %v418_v43, %v406_v32  ;;  %v469_v58 = vmul.f32 %v466_v40, %v1445_v11  ;;  %v565_v36 = vld [vmem:[#allocation5 + $0xe8] sm:$0xf0]  ;;  %v531_v41 = vld [vmem:[#allocation5 + $0xc8] sm:$0xf]  ;;  %p1158_p7 = scmp.lt.s32.totalorder %s1616_s8, %s1156_s22 }
  0x80   : > { %v482_v61 = vrot.slane %v476_v48, 4  ;;  %v509_v62 = vrot.slane %v503_v51, 4  ;;  %v475_v63 = vmul.f32 %v472_v45, %v1447_v12  ;;  %v493_v1 = vmul.f32 %v490_v46, %v1453_v18  ;;  %v537_v46 = vld [vmem:[#allocation5 + $0xc8] sm:$0xf0]  ;;  %p1154_p3 = pneg %p1153_p1 }
  0x81   : > { %389 = vrot.lane.b32.xlu0 %v385_v55, %s1228_s18  ;;  %v452_v5 = vadd.f32 %v446_v37, %v434_v56  ;;  %v433_v4 = vadd.f32 %v430_v38, %v424_v57  ;;  %v502_v6 = vmul.f32 %v499_v52, %v1455_v19  ;;  %v533_v7 = vmul.f32 %v530_v53, %v1445_v11  ;;  %v564_v53 = vld [vmem:[#allocation5 + $0xe0] sm:$0xf0]  ;;  %v595_v55 = vld [vmem:[#allocation5 + $0xf8] sm:$0xf]  ;;  %s1157_s18 = scalar_lea.vmem %s1156_s22, 384 }
  0x82   : > { %v488_v16 = vadd.f32 %v482_v61, %v470_v44  ;;  %v481_v17 = vrot.slane %v475_v63, 4  ;;  %v539_v20 = vmul.f32 %v536_v59, %v1447_v12  ;;  %v557_v21 = vmul.f32 %v554_v60, %v1453_v18  ;;  %v601_v60 = vld [vmem:[#allocation5 + $0xf8] sm:$0xf0]  ;;  %v619_v61 = vld [vmem:[#allocation5 + $0x110] sm:$0xf]  ;;  %p1159_p9 = scmp.lt.s32.totalorder %s1157_s18, %s1151_s16 }
  0x83   : > { %457 = vrot.lane.b32.xlu1 %v452_v5, %s1229_s20  ;;  %v451_v24 = vadd.f32 %v445_v47, %v433_v4  ;;  %v508_v27 = vrot.slane %v502_v6, 4  ;;  %v566_v28 = vmul.f32 %v563_v2, %v1455_v19  ;;  %v471_v29 = vmul.f32 %v468_v3, %v1441_v9  ;;  %v555_v47 = vld [vmem:[#allocation5 + $0xe0] sm:$0xf]  ;;  %v628_v3 = vld [vmem:[#allocation5 + $0x110] sm:$0xf0] }
  0x84   : > { %v497_v31 = vadd.f32 %v494_v50, %v488_v16  ;;  %v487_v32 = vadd.f32 %v481_v17, %v469_v58  ;;  %v545_v33 = vrot.slane %v539_v20, 4  ;;  %v477_v34 = vmul.f32 %v474_v8, %v1443_v10  ;;  %v594_v5 = vld [vmem:[#allocation5 + $0xf0] sm:$0xf]  ;;  %v618_v16 = vld [vmem:[#allocation5 + $0x108] sm:$0xf]  ;;  %p1160_p12 = por %p1159_p9, %p1158_p7 }
  0x85   : > { %455 = vrot.lane.b32.xlu0 %v451_v24, %s1229_s20  ;;  %v572_v37 = vrot.slane %v566_v28, 4  ;;  %v495_v38 = vmul.f32 %v492_v15, %v1449_v13  ;;  %v504_v39 = vmul.f32 %v501_v22, %v1451_v14  ;;  %v535_v40 = vmul.f32 %v532_v23, %v1441_v9  ;;  %v600_v15 = vld [vmem:[#allocation5 + $0xf0] sm:$0xf0]  ;;  %v627_v23 = vld [vmem:[#allocation5 + $0x108] sm:$0xf0] }
  0x86   : > { %v515_v42 = vadd.f32 %v509_v62, %v497_v31  ;;  %v496_v43 = vadd.f32 %v493_v1, %v487_v32  ;;  %v551_v44 = vadd.f32 %v545_v33, %v533_v7  ;;  %v483_v45 = vrot.slane %v477_v34, 4  ;;  %v658_v24 = vld [vmem:[#allocation5 + $0x120] sm:$0xf]  ;;  %v664_v31 = vld [vmem:[#allocation5 + $0x120] sm:$0xf0]  ;;  %p1161_p2 = pnand %p1160_p12, %p1154_p3 }
  0x87   : > { %v510_v48 = vrot.slane %v504_v39, 4  ;;  %v541_v50 = vmul.f32 %v538_v30, %v1443_v10  ;;  %v559_v51 = vmul.f32 %v556_v35, %v1449_v13  ;;  %v568_v52 = vmul.f32 %v565_v36, %v1451_v14  ;;  %v682_v36 = vld [vmem:[#allocation5 + $0x138] sm:$0xf] }
  0x88   : > { %519 = vrot.lane.b32.xlu1 %v515_v42, %s1230_s10  ;;  %v514_v56 = vadd.f32 %v508_v27, %v496_v43  ;;  %v560_v57 = vadd.f32 %v557_v21, %v551_v44  ;;  %v489_v58 = vadd.f32 %v483_v45, %v471_v29  ;;  %v534_v59 = vmul.f32 %v531_v41, %v1459_v25  ;;  %v596_v42 = vld [vmem:[#allocation5 + $0x100] sm:$0xf] }
  0x89   : > { %v547_v62 = vrot.slane %v541_v50, 4  ;;  %v574_v63 = vrot.slane %v568_v52, 4  ;;  %v540_v1 = vmul.f32 %v537_v46, %v1461_v26  ;;  %v558_v2 = vmul.f32 %v555_v47, %v1473_v49  ;;  %v602_v47 = vld [vmem:[#allocation5 + $0x100] sm:$0xf0] }
  0x8a   : > { %517 = vrot.lane.b32.xlu0 %v514_v56, %s1230_s10  ;;  %v578_v4 = vadd.f32 %v572_v37, %v560_v57  ;;  %v498_v6 = vadd.f32 %v495_v38, %v489_v58  ;;  %v567_v7 = vmul.f32 %v564_v53, %v1475_v54  ;;  %v598_v8 = vmul.f32 %v595_v55, %v1459_v25  ;;  %v691_v37 = vld [vmem:[#allocation5 + $0x138] sm:$0xf0]  ;;  %v660_v56 = vld [vmem:[#allocation5 + $0x130] sm:$0xf] }
  0x8b   : > { %v553_v17 = vadd.f32 %v547_v62, %v535_v40  ;;  %v546_v20 = vrot.slane %v540_v1, 4  ;;  %v604_v21 = vmul.f32 %v601_v60, %v1461_v26  ;;  %v622_v22 = vmul.f32 %v619_v61, %v1473_v49  ;;  %v629_v55 = vld [vmem:[#allocation5 + $0x118] sm:$0xf0]  ;;  %v666_v61 = vld [vmem:[#allocation5 + $0x130] sm:$0xf0] }
  0x8c   : > { %581 = vrot.lane.b32.xlu1 %v578_v4, %s1231_s21  ;;  %v516_v27 = vadd.f32 %v510_v48, %v498_v6  ;;  %v573_v28 = vrot.slane %v567_v7, 4  ;;  %v631_v29 = vmul.f32 %v628_v3, %v1475_v54  ;;  %v597_v30 = vmul.f32 %v594_v5, %v1445_v11  ;;  %v620_v48 = vld [vmem:[#allocation5 + $0x118] sm:$0xf]  ;;  %v684_v62 = vld [vmem:[#allocation5 + $0x148] sm:$0xf] }
  0x8d   : > { %v562_v32 = vadd.f32 %v559_v51, %v553_v17  ;;  %v552_v33 = vadd.f32 %v546_v20, %v534_v59  ;;  %v610_v34 = vrot.slane %v604_v21, 4  ;;  %v603_v35 = vmul.f32 %v600_v15, %v1447_v12  ;;  %v693_v5 = vld [vmem:[#allocation5 + $0x148] sm:$0xf0]  ;;  %v659_v4 = vld [vmem:[#allocation5 + $0x128] sm:$0xf] }
  0x8e   : > { %521 = vrot.lane.b32.xlu0 %v516_v27, %s1230_s10  ;;  %v637_v38 = vrot.slane %v631_v29, 4  ;;  %v621_v39 = vmul.f32 %v618_v16, %v1453_v18  ;;  %v630_v40 = vmul.f32 %v627_v23, %v1455_v19  ;;  %v661_v41 = vmul.f32 %v658_v24, %v1445_v11  ;;  %v665_v16 = vld [vmem:[#allocation5 + $0x128] sm:$0xf0]  ;;  %v683_v17 = vld [vmem:[#allocation5 + $0x140] sm:$0xf] }
  0x8f   : > { %v580_v43 = vadd.f32 %v574_v63, %v562_v32  ;;  %v561_v44 = vadd.f32 %v558_v2, %v552_v33  ;;  %v616_v45 = vadd.f32 %v610_v34, %v598_v8  ;;  %v609_v46 = vrot.slane %v603_v35, 4  ;;  %v692_v24 = vld [vmem:[#allocation5 + $0x140] sm:$0xf0]  ;;  %v723_v27 = vld [vmem:[#allocation5 + $0x158] sm:$0xf] }
  0x90   : > { %v636_v50 = vrot.slane %v630_v40, 4  ;;  %v667_v51 = vmul.f32 %v664_v31, %v1447_v12  ;;  %v685_v52 = vmul.f32 %v682_v36, %v1453_v18  ;;  %v694_v53 = vmul.f32 %v691_v37, %v1455_v19  ;;  %v729_v32 = vld [vmem:[#allocation5 + $0x158] sm:$0xf0]  ;;  %v747_v37 = vld [vmem:[#allocation5 + $0x170] sm:$0xf] }
  0x91   : > { %585 = vrot.lane.b32.xlu1 %v580_v43, %s1231_s21  ;;  %v579_v57 = vadd.f32 %v573_v28, %v561_v44  ;;  %v625_v58 = vadd.f32 %v622_v22, %v616_v45  ;;  %v615_v59 = vadd.f32 %v609_v46, %v597_v30  ;;  %v599_v60 = vmul.f32 %v596_v42, %v1441_v9  ;;  %v722_v43 = vld [vmem:[#allocation5 + $0x150] sm:$0xf] }
  0x92   : > { %v673_v63 = vrot.slane %v667_v51, 4  ;;  %v700_v1 = vrot.slane %v694_v53, 4  ;;  %v605_v2 = vmul.f32 %v602_v47, %v1443_v10  ;;  %v623_v3 = vmul.f32 %v620_v48, %v1449_v13  ;;  %v728_v48 = vld [vmem:[#allocation5 + $0x150] sm:$0xf0] }
  0x93   : > { %583 = vrot.lane.b32.xlu0 %v579_v57, %s1231_s21  ;;  %v643_v6 = vadd.f32 %v637_v38, %v625_v58  ;;  %v624_v7 = vadd.f32 %v621_v39, %v615_v59  ;;  %v632_v8 = vmul.f32 %v629_v55, %v1451_v14  ;;  %v663_v15 = vmul.f32 %v660_v56, %v1441_v9  ;;  %v756_v38 = vld [vmem:[#allocation5 + $0x170] sm:$0xf0]  ;;  %v755_v56 = vld [vmem:[#allocation5 + $0x168] sm:$0xf0]  ;;  %v786_v57 = vld [vmem:[#allocation5 + $0x180] sm:$0xf] }
  0x94   : > { %v679_v20 = vadd.f32 %v673_v63, %v661_v41  ;;  %v611_v21 = vrot.slane %v605_v2, 4  ;;  %v669_v22 = vmul.f32 %v666_v61, %v1443_v10  ;;  %v687_v23 = vmul.f32 %v684_v62, %v1449_v13  ;;  %v792_v62 = vld [vmem:[#allocation5 + $0x180] sm:$0xf0]  ;;  %v810_v63 = vld [vmem:[#allocation5 + $0x198] sm:$0xf] }
  0x95   : > { %647 = vrot.lane.b32.xlu1 %v643_v6, %s1232_s26  ;;  %v642_v28 = vadd.f32 %v636_v50, %v624_v7  ;;  %v638_v29 = vrot.slane %v632_v8, 4  ;;  %v696_v30 = vmul.f32 %v693_v5, %v1451_v14  ;;  %v662_v31 = vmul.f32 %v659_v4, %v1459_v25  ;;  %v746_v50 = vld [vmem:[#allocation5 + $0x168] sm:$0xf]  ;;  %v819_v4 = vld [vmem:[#allocation5 + $0x198] sm:$0xf0] }
  0x96   : > { %v688_v33 = vadd.f32 %v685_v52, %v679_v20  ;;  %v617_v34 = vadd.f32 %v611_v21, %v599_v60  ;;  %v675_v35 = vrot.slane %v669_v22, 4  ;;  %v668_v36 = vmul.f32 %v665_v16, %v1461_v26  ;;  %v724_v6 = vld [vmem:[#allocation5 + $0x160] sm:$0xf] }
  0x97   : > { %645 = vrot.lane.b32.xlu0 %v642_v28, %s1232_s26  ;;  %v702_v39 = vrot.slane %v696_v30, 4  ;;  %v686_v40 = vmul.f32 %v683_v17, %v1473_v49  ;;  %v695_v41 = vmul.f32 %v692_v24, %v1475_v54  ;;  %v726_v42 = vmul.f32 %v723_v27, %v1459_v25  ;;  %v730_v17 = vld [vmem:[#allocation5 + $0x160] sm:$0xf0]  ;;  %v748_v24 = vld [vmem:[#allocation5 + $0x178] sm:$0xf] }
  0x98   : > { %v706_v44 = vadd.f32 %v700_v1, %v688_v33  ;;  %v626_v45 = vadd.f32 %v623_v3, %v617_v34  ;;  %v681_v46 = vadd.f32 %v675_v35, %v663_v15  ;;  %v674_v47 = vrot.slane %v668_v36, 4  ;;  %v757_v27 = vld [vmem:[#allocation5 + $0x178] sm:$0xf0] }
  0x99   : > { %v701_v51 = vrot.slane %v695_v41, 4  ;;  %v732_v52 = vmul.f32 %v729_v32, %v1461_v26  ;;  %v750_v53 = vmul.f32 %v747_v37, %v1473_v49  ;;  %v759_v55 = vmul.f32 %v756_v38, %v1475_v54  ;;  %v788_v32 = vld [vmem:[#allocation5 + $0x190] sm:$0xf]  ;;  %v794_v37 = vld [vmem:[#allocation5 + $0x190] sm:$0xf0] }
  0x9a   : > { %709 = vrot.lane.b32.xlu1 %v706_v44, %s1233_s27  ;;  %v644_v58 = vadd.f32 %v638_v29, %v626_v45  ;;  %v690_v59 = vadd.f32 %v687_v23, %v681_v46  ;;  %v680_v60 = vadd.f32 %v674_v47, %v662_v31  ;;  %v725_v61 = vmul.f32 %v722_v43, %v1445_v11  ;;  %v821_v38 = vld [vmem:[#allocation5 + $0x1a8] sm:$0xf0]  ;;  %v787_v47 = vld [vmem:[#allocation5 + $0x188] sm:$0xf] }
  0x9b   : > { %v738_v1 = vrot.slane %v732_v52, 4  ;;  %v765_v2 = vrot.slane %v759_v55, 4  ;;  %v731_v3 = vmul.f32 %v728_v48, %v1447_v12  ;;  %v749_v5 = vmul.f32 %v746_v50, %v1453_v18  ;;  %v793_v48 = vld [vmem:[#allocation5 + $0x188] sm:$0xf0]  ;;  %v820_v55 = vld [vmem:[#allocation5 + $0x1a0] sm:$0xf0] }
  0x9c   : > { %649 = vrot.lane.b32.xlu0 %v644_v58, %s1232_s26  ;;  %v708_v7 = vadd.f32 %v702_v39, %v690_v59  ;;  %v689_v8 = vadd.f32 %v686_v40, %v680_v60  ;;  %v758_v15 = vmul.f32 %v755_v56, %v1455_v19  ;;  %v789_v16 = vmul.f32 %v786_v57, %v1445_v11  ;;  %v243_v56 = vld [vmem:[#allocation5] sm:$0xf0] }
  0x9d   : > { %v744_v20 = vadd.f32 %v738_v1, %v726_v42  ;;  %v737_v21 = vrot.slane %v731_v3, 4  ;;  %v795_v22 = vmul.f32 %v792_v62, %v1447_v12  ;;  %v813_v23 = vmul.f32 %v810_v63, %v1453_v18  ;;  %v812_v42 = vld [vmem:[#allocation5 + $0x1a8] sm:$0xf]  ;;  %v302_v62 = vld [vmem:[#allocation5 + $0x18] sm:$0xf0] }
  0x9e   : > { %713 = vrot.lane.b32.xlu1 %v708_v7, %s1233_s27  ;;  %v707_v28 = vadd.f32 %v701_v51, %v689_v8  ;;  %v764_v29 = vrot.slane %v758_v15, 4  ;;  %v822_v30 = vmul.f32 %v819_v4, %v1455_v19  ;;  %v727_v31 = vmul.f32 %v724_v6, %v1441_v9  ;;  %v221_v8 = vld [vmem:[#allocation5] sm:$0xf] }
  0x9f   : > { %v753_v33 = vadd.f32 %v750_v53, %v744_v20  ;;  %v743_v34 = vadd.f32 %v737_v21, %v725_v61  ;;  %v801_v35 = vrot.slane %v795_v22, 4  ;;  %v733_v36 = vmul.f32 %v730_v17, %v1443_v10  ;;  %v811_v61 = vld [vmem:[#allocation5 + $0x1a0] sm:$0xf]  ;;  %v223_v17 = vld [vmem:[#allocation5 + $0x10] sm:$0xf] }
  0xa0   : > { %711 = vrot.lane.b32.xlu0 %v707_v28, %s1233_s27  ;;  %v828_v39 = vrot.slane %v822_v30, 4  ;;  %v751_v40 = vmul.f32 %v748_v24, %v1449_v13  ;;  %v760_v41 = vmul.f32 %v757_v27, %v1451_v14  ;;  %v791_v51 = vmul.f32 %v788_v32, %v1441_v9  ;;  %v244_v24 = vld [vmem:[#allocation5 + $0x8] sm:$0xf0]  ;;  %v245_v27 = vld [vmem:[#allocation5 + $0x10] sm:$0xf0] }
  0xa1   : > { %v771_v43 = vadd.f32 %v765_v2, %v753_v33  ;;  %v752_v44 = vadd.f32 %v749_v5, %v743_v34  ;;  %v807_v45 = vadd.f32 %v801_v35, %v789_v16  ;;  %v739_v46 = vrot.slane %v733_v36, 4  ;;  %v277_v5 = vld [vmem:[#allocation5 + $0x18] sm:$0xf]  ;;  %v222_v16 = vld [vmem:[#allocation5 + $0x8] sm:$0xf] }
  0xa2   : > { %v766_v50 = vrot.slane %v760_v41, 4  ;;  %v797_v52 = vmul.f32 %v794_v37, %v1443_v10  ;;  %v824_v53 = vmul.f32 %v821_v38, %v1451_v14  ;;  %v815_v60 = vmul.f32 %v812_v42, %v1449_v13  ;;  %v278_v32 = vld [vmem:[#allocation5 + $0x20] sm:$0xf]  ;;  %v279_v36 = vld [vmem:[#allocation5 + $0x28] sm:$0xf] }
  0xa3   : > { %775 = vrot.lane.b32.xlu1 %v771_v43, %s1234_s29  ;;  %v770_v57 = vadd.f32 %v764_v29, %v752_v44  ;;  %v816_v58 = vadd.f32 %v813_v23, %v807_v45  ;;  %v745_v59 = vadd.f32 %v739_v46, %v727_v31  ;;  %v790_v2 = vmul.f32 %v787_v47, %v1459_v25  ;;  %v303_v37 = vld [vmem:[#allocation5 + $0x20] sm:$0xf0]  ;;  %v304_v41 = vld [vmem:[#allocation5 + $0x28] sm:$0xf0] }
  0xa4   : > { %v803_v63 = vrot.slane %v797_v52, 4  ;;  %v830_v1 = vrot.slane %v824_v53, 4  ;;  %v796_v3 = vmul.f32 %v793_v48, %v1461_v26  ;;  %v823_v7 = vmul.f32 %v820_v55, %v1475_v54 }
  0xa5   : > { %773 = vrot.lane.b32.xlu0 %v770_v57, %s1234_s29  ;;  %v834_v4 = vadd.f32 %v828_v39, %v816_v58  ;;  %v754_v6 = vadd.f32 %v751_v40, %v745_v59  ;;  %v262_v15 = vmul.f32 %v1447_v12, %v243_v56  ;;  %v814_v22 = vmul.f32 %v811_v61, %v1473_v49 }
  0xa6   : > { %v809_v20 = vadd.f32 %v803_v63, %v791_v51  ;;  %v802_v21 = vrot.slane %v796_v3, 4  ;;  %v321_v23 = vmul.f32 %v1455_v19, %v302_v62  ;;  %v829_v29 = vrot.slane %v823_v7, 4 }
  0xa7   : > { %837 = vrot.lane.b32.xlu1 %v834_v4, %s1235_s30  ;;  %v772_v28 = vadd.f32 %v766_v50, %v754_v6  ;;  %v268_v30 = vrot.slane %v262_v15, 4  ;;  %v296_v31 = vmul.f32 %v1453_v18, %v277_v5  ;;  %v240_v35 = vmul.f32 %v1445_v11, %v221_v8 }
  0xa8   : > { %v818_v12 = vadd.f32 %v815_v60, %v809_v20  ;;  %v808_v33 = vadd.f32 %v802_v21, %v790_v2  ;;  %v327_v34 = vrot.slane %v321_v23, 4  ;;  %v241_v19 = vmul.f32 %v1459_v25, %v222_v16 }
  0xa9   : > { %777 = vrot.lane.b32.xlu0 %v772_v28, %s1234_s29  ;;  %v242_v38 = vmul.f32 %v1441_v9, %v223_v17  ;;  %v263_v39 = vmul.f32 %v1461_v26, %v244_v24  ;;  %v264_v40 = vmul.f32 %v1443_v10, %v245_v27  ;;  %v274_v43 = vadd.f32 %v268_v30, %v240_v35 }
  0xaa   : > { %v836_v18 = vadd.f32 %v830_v1, %v818_v12  ;;  %v817_v42 = vadd.f32 %v814_v22, %v808_v33  ;;  %v297_v44 = vmul.f32 %v1473_v49, %v278_v32  ;;  %v298_v46 = vmul.f32 %v1449_v13, %v279_v36 }
  0xab   : > { %v269_v45 = vrot.slane %v263_v39, 4  ;;  %v270_v11 = vrot.slane %v264_v40, 4  ;;  %v322_v47 = vmul.f32 %v1475_v54, %v303_v37  ;;  %v299_v9 = vadd.f32 %v296_v31, %v274_v43 }
  0xac   : > { %841 = vrot.lane.b32.xlu1 %v836_v18, %s1235_s30  ;;  %v835_v25 = vadd.f32 %v829_v29, %v817_v42  ;;  %v323_v26 = vmul.f32 %v1451_v14, %v304_v41  ;;  %v1598_v13 = vand.u32 127, %v225_v0 }
  0xad   : > { %v275_v48 = vadd.f32 %v269_v45, %v241_v19  ;;  %v276_v10 = vadd.f32 %v270_v11, %v242_v38  ;;  %v328_v50 = vrot.slane %v322_v47, 4  ;;  %v333_v51 = vadd.f32 %v327_v34, %v299_v9 }
  0xae   : > { %839 = vrot.lane.b32.xlu0 %v835_v25, %s1235_s30  ;;  %v329_v52 = vrot.slane %v323_v26, 4  ;;  %vm395_vm0 = vcmp.lt.s32.totalorder %v1598_v13, 1  ;;  %vm459_vm1 = vcmp.lt.s32.totalorder %v1598_v13, 2  ;;  %vm523_vm2 = vcmp.lt.s32.totalorder %v1598_v13, 18 }
  0xaf   : > { %v300_v49 = vadd.f32 %v297_v44, %v275_v48  ;;  %v301_v53 = vadd.f32 %v298_v46, %v276_v10  ;;  %vm587_vm3 = vcmp.lt.s32.totalorder %v1598_v13, 19  ;;  %vm651_vm4 = vcmp.lt.s32.totalorder %v1598_v13, 20 }
  0xb0   : > { %vm715_vm5 = vcmp.lt.s32.totalorder %v1598_v13, 36  ;;  %vm779_vm6 = vcmp.lt.s32.totalorder %v1598_v13, 37  ;;  %vm843_vm7 = vcmp.lt.s32.totalorder %v1598_v13, 38 }
  0xb1   : > { %v334_v55 = vadd.f32 %v328_v50, %v300_v49  ;;  %v335_v56 = vadd.f32 %v329_v52, %v301_v53 }
  0xed   : > { %v392_v54 = vpop.permute.xlu1 %391 }
  0xee   : > { %v388_v57 = vpop.permute.xlu0 %387 }
  0xef   : > { %v398_v58 = vsel %vm395_vm0, %v392_v54, %v388_v57 }
  0xf0   : > { %v399_v14 = vadd.f32 %v398_v58, %v333_v51 }
  0xf1   : > { %v454_v59 = vpop.permute.xlu1 %453 }
  0xf3   : > { %v390_v60 = vpop.permute.xlu0 %389 }
  0xf4   : > { %v396_v61 = vsel %vm395_vm0, %v390_v60, %v392_v54  ;;  %v397_v62 = vsel %vm395_vm0, %v388_v57, %v390_v60  ;;  %v850_v57 = vld [vmem:[#allocation7] sm:$0xff] }
  0xf5   : > { %v400_v63 = vadd.f32 %v397_v62, %v334_v55  ;;  %v401_v1 = vadd.f32 %v396_v61, %v335_v56  ;;  %v458_v2 = vpop.permute.xlu1 %457  ;;  %v853_v60 = vcombine.high %v850_v57, %v850_v57  ;;  %v851_v62 = vld [vmem:[#allocation7 + $0x8] sm:$0xf] }
  0xf6   : > { %v462_v3 = vsel %vm459_vm1, %v458_v2, %v454_v59 }
  0xf7   : > { %v463_v5 = vadd.f32 %v462_v3, %v399_v14  ;;  %v456_v4 = vpop.permute.xlu0 %455 }
  0xf8   : > { %v460_v0 = vsel %vm459_vm1, %v456_v4, %v458_v2  ;;  %v461_v6 = vsel %vm459_vm1, %v454_v59, %v456_v4 }
  0xf9   : > { %v464_v7 = vadd.f32 %v461_v6, %v400_v63  ;;  %v465_v8 = vadd.f32 %v460_v0, %v401_v1 }
  0xfa   : > { %v520_v15 = vpop.permute.xlu1 %519 }
  0xfc   : > { %v518_v16 = vpop.permute.xlu0 %517 }
  0xfd   : > { %v525_v17 = vsel %vm523_vm2, %v518_v16, %v520_v15 }
  0xfe   : > { %v528_v20 = vadd.f32 %v525_v17, %v464_v7  ;;  %v582_v21 = vpop.permute.xlu1 %581 }
 0x100   : > { %v522_v22 = vpop.permute.xlu0 %521 }
 0x101   : > { %v524_v23 = vsel %vm523_vm2, %v520_v15, %v522_v22  ;;  %v526_v24 = vsel %vm523_vm2, %v522_v22, %v518_v16 }
 0x102   : > { %v527_v27 = vadd.f32 %v526_v24, %v463_v5  ;;  %v529_v28 = vadd.f32 %v524_v23, %v465_v8 }
 0x103   : > { %v586_v29 = vpop.permute.xlu1 %585 }
 0x104   : > { %v590_v30 = vsel %vm587_vm3, %v586_v29, %v582_v21 }
 0x105   : > { %v591_v31 = vadd.f32 %v590_v30, %v527_v27  ;;  %v584_v32 = vpop.permute.xlu0 %583 }
 0x106   : > { %v588_v12 = vsel %vm587_vm3, %v584_v32, %v586_v29  ;;  %v589_v33 = vsel %vm587_vm3, %v582_v21, %v584_v32 }
 0x107   : > { %v592_v34 = vadd.f32 %v589_v33, %v528_v20  ;;  %v593_v35 = vadd.f32 %v588_v12, %v529_v28  ;;  %v648_v36 = vpop.permute.xlu1 %647 }
 0x109   : > { %v646_v37 = vpop.permute.xlu0 %645 }
 0x10a   : > { %v653_v19 = vsel %vm651_vm4, %v646_v37, %v648_v36 }
 0x10b   : > { %v656_v38 = vadd.f32 %v653_v19, %v592_v34 }
 0x10c   : > { %v710_v39 = vpop.permute.xlu1 %709 }
 0x10e   : > { %v650_v40 = vpop.permute.xlu0 %649 }
 0x10f   : > { %v652_v41 = vsel %vm651_vm4, %v648_v36, %v650_v40  ;;  %v654_v18 = vsel %vm651_vm4, %v650_v40, %v646_v37 }
 0x110   : > { %v655_v42 = vadd.f32 %v654_v18, %v591_v31  ;;  %v657_v43 = vadd.f32 %v652_v41, %v593_v35  ;;  %v714_v44 = vpop.permute.xlu1 %713 }
 0x111   : > { %v718_v45 = vsel %vm715_vm5, %v714_v44, %v710_v39 }
 0x112   : > { %v719_v11 = vadd.f32 %v718_v45, %v655_v42  ;;  %v712_v46 = vpop.permute.xlu0 %711 }
 0x113   : > { %v716_v47 = vsel %vm715_vm5, %v712_v46, %v714_v44  ;;  %v717_v25 = vsel %vm715_vm5, %v710_v39, %v712_v46 }
 0x114   : > { %v720_v9 = vadd.f32 %v717_v25, %v656_v38  ;;  %v721_v26 = vadd.f32 %v716_v47, %v657_v43 }
 0x115   : > { %v776_v48 = vpop.permute.xlu1 %775 }
 0x117   : > { %v774_v10 = vpop.permute.xlu0 %773 }
 0x118   : > { %v781_v50 = vsel %vm779_vm6, %v774_v10, %v776_v48 }
 0x119   : > { %v784_v51 = vadd.f32 %v781_v50, %v720_v9  ;;  %v838_v52 = vpop.permute.xlu1 %837 }
 0x11b   : > { %v778_v49 = vpop.permute.xlu0 %777 }
 0x11c   : > { %v780_v53 = vsel %vm779_vm6, %v776_v48, %v778_v49  ;;  %v782_v55 = vsel %vm779_vm6, %v778_v49, %v774_v10 }
 0x11d   : > { %v783_v56 = vadd.f32 %v782_v55, %v719_v11  ;;  %v785_v54 = vadd.f32 %v780_v53, %v721_v26 }
 0x11e   : > { %v842_v58 = vpop.permute.xlu1 %841 }
 0x11f   : > { %v846_v14 = vsel %vm843_vm7, %v842_v58, %v838_v52 }
 0x120   : > { %v847_v59 = vadd.f32 %v846_v14, %v783_v56  ;;  %v840_v61 = vpop.permute.xlu0 %839 }
 0x121   : > { %v844_v63 = vsel %vm843_vm7, %v840_v61, %v842_v58  ;;  %v845_v1 = vsel %vm843_vm7, %v838_v52, %v840_v61 }
 0x122   : > { %v855_v2 = vadd.f32 %v850_v57, %v847_v59  ;;  %v848_v3 = vadd.f32 %v845_v1, %v784_v51  ;;  %v849_v5 = vadd.f32 %v844_v63, %v785_v54 }
 0x124   : > { %v856_v13 = vadd.f32 %v853_v60, %v848_v3  ;;  %v857_v4 = vadd.f32 %v851_v62, %v849_v5 }
 0x126   : > { %v860_v0 = vcombine.low %v855_v2, %v856_v13  ;;  %863 = vst [vmem:[%s213_s5 + $0x8] sm:$0xf] %v857_v4 }
 0x128   : > { %862 = vst [vmem:[%s213_s5] sm:$0xff] %v860_v0 }
 0x129   : > { %1164 = shalt.err (!%p1161_p2)
}
 0x12a   : > { %s1165_s17 = scalar_lea.hbm %s1614_s11, 192  ;;  %s1169_s21 = scalar_lea.hbm %s1661_s3, 384 }
 0x12b   : > { %p1166_p13 = scmp.ne.s32.totalorder %s1614_s11, %s1165_s17  ;;  %p1170_p4 = scmp.lt.u32.totalorder %s1614_s11, %s1661_s3 }
 0x12c   : > { %p1171_p5 = scmp.lt.u32.totalorder %s1169_s21, %s1165_s17  ;;  %p1173_p11 = scmp.lt.u32.totalorder %s1165_s17, %s1614_s11 }
 0x12d   : > { %p1167_p6 = pnand %p1166_p13, %p1675_p0 }
 0x12e   : > { %p1172_p8 = por %p1171_p5, %p1170_p4 }
 0x12f   : > { %p1168_p10 = pneg %p1167_p6 }
 0x130   : > { %p1174_p1 = por %p1173_p11, %p1172_p8 }
 0x132   : > { %p1175_p3 = pnand %p1174_p1, %p1168_p10 }
 0x134   : > { %1178 = shalt.err (!%p1175_p3)
}
 0x135   : > { %997 = dma.vmem_to_hbm [thread:$0]  (%p1675_p0), %s1616_s8, 192, %s1614_s11, %s865_s28  }
 0x136 PF: > { %s891_s29 = sand.u32 1, %s1209_s12   ;;  %p1676_p7 = scmp.ne.s32.totalorder %s1666_s19, 0 }
 0x137   : > { %p1677_p9 = scmp.ge.s32.totalorder %s1221_s15, 2  ;;  %s892_s30 = scalar_lea.sflag [#allocation4], %s891_s29 }
 0x139   : > { %p1011_p12 = pnand %p1677_p9, %p1676_p7 }
 0x13b   : > { %1204 = dma.done.wait (!%p1011_p12), %s892_s30, 192  }
 0x13c   : > { %1206 = vsyncadd (!%p1011_p12), %s892_s30, 4294967104  ;;  %p17_p2 = scmp.ge.s32.totalorder %s1367_s4, 4   ;;  %s1678_s12 = smov %s1213_s13 }
 0x13d   : > { %s1679_s13 = smov %s1217_s14  ;;  %s1680_s14 = smov %s1383_s7 }
 0x13e   : > { %s1681_s15 = smov %s1367_s4  ;;  %19 = sbr.rel (!%p17_p2) target bundleno = 6 (0x6), region = 88 }
 0x145   :  { %897 = vsyncpa [#allocation3], 1 }
 0x146   :  { %899 = vsyncpa [#allocation3 + $0x1], 1 }
 0x147   :  { %900 = vsyncpa [#allocation6], 1 }
 0x148   :  { %901 = vsyncpa [#allocation4], 1 }
 0x149   :  { %903 = vsyncpa [#allocation4 + $0x1], 1 }

</bundles_post_ra>
